<compile_context>
chip_gen: v7x
topology: tpu7x:2x2x1
jax: 0.10.0
libtpu: 0.0.40
codegen_flags: <defaults>
</compile_context>

<pallas_src>
import functools

import jax
import jax.numpy as jnp
from jax import lax
from jax.experimental import pallas as pl
from jax.experimental.pallas import tpu as pltpu


def _make_stack_encoder_kernel(*, cin, cout, kh, kw, h, w, padding):
    wp = w + 2 * padding                      # padded row width (wide row stride)
    hwp = h * wp                              # wide per-image trace length
    shift = padding * wp + padding            # flat offset of padded coord (0,0)
    l1 = (h + 2 * padding + 1) * wp           # conv1 output = padded-wide y1 length
    lx = l1 + 2 * shift                       # staged-input scratch length
    l4 = hwp - wp - 1                         # valid length of 2x2 window-max vector
    taps = [i * wp + j for i in range(kh) for j in range(kw)]

    def kernel(x_ref, w1_ref, b1_ref, w2_ref, b2_ref, m1_ref,
               trace_ref, pool_ref, xbuf_ref, xs_ref, ys_ref):
        # ---- stage raw (cin, h*w) f32 rows into the zero-padded bf16 wide scratch
        # (row stride w -> wp). Replaces the wrapper-side padded HBM copy.
        xbuf_ref[...] = jnp.zeros((cin, lx), jnp.bfloat16)
        for r in range(h):
            u = (r + padding) * wp + padding + shift
            xbuf_ref[:, u:u + w] = x_ref[0, :, r * w:(r + 1) * w].astype(jnp.bfloat16)
        xb = xbuf_ref[...]                                     # (cin, lx) bf16

        # ---- conv1 (+ folded BN): stack the 9 shifted slices along sublanes, then
        # ONE (cout, 9*cin) x (9*cin, l1) bf16 MXU matmul with f32 accumulation.
        # Computed over the full padded range so the masked result is already the
        # zero-padded conv2 input (no re-pad scratch / store between the convs).
        for t, s in enumerate(taps):
            xs_ref[t * cin:(t + 1) * cin, :] = xb[:, s:s + l1]
        acc1 = jnp.dot(w1_ref[...], xs_ref[...], preferred_element_type=jnp.float32)
        y1p = (jnp.maximum(acc1 + b1_ref[...], 0.0) * m1_ref[...]).astype(jnp.bfloat16)
        # TODO(synk): Dropout2d between the convs is identity in eval mode.

        # ---- conv2 (+ folded BN): same scheme, ONE (cout, 9*cout) x (9*cout, hwp).
        for t, s in enumerate(taps):
            ys_ref[t * cout:(t + 1) * cout, :] = y1p[:, s:s + hwp]
        acc2 = jnp.dot(w2_ref[...], ys_ref[...], preferred_element_type=jnp.float32)
        y2 = jnp.maximum(acc2 + b2_ref[...], 0.0)              # (cout, hwp) f32
        trace_ref[0] = y2                                      # single output store

        # ---- fused 2x2 stride-2 maxpool: window max straight from the in-register y2
        # (no store->reload, no selection-matrix matmul). Output stays in wide layout
        # (>=128 lanes -> dense stores); the wrapper picks the even-row/even-col
        # anchors with a free strided slice.
        p00 = y2[:, 0:l4]
        p01 = y2[:, 1:1 + l4]
        p10 = y2[:, wp:wp + l4]
        p11 = y2[:, wp + 1:wp + 1 + l4]
        wmax = jnp.maximum(jnp.maximum(p00, p01), jnp.maximum(p10, p11))
        pool_ref[0, :, 0:l4] = wmax
        pool_ref[0, :, l4:hwp] = jnp.zeros((cout, hwp - l4), jnp.float32)

    return kernel


def _fold_bn(w, b, gamma, beta, mean, var, eps, use_bn):
    if not use_bn:
        return w, b
    scale = gamma / jnp.sqrt(var + eps)
    return w * scale[:, None, None, None], (b - mean) * scale + beta


@functools.partial(
    jax.jit,
    static_argnames=("kernel_size", "padding", "stride", "pool_kernel",
                     "pool_stride", "use_bn"))
def stack_encoder_forward(x, w1, b1, g1, beta1, m1, v1,
                          w2, b2, g2, beta2, m2, v2, *,
                          kernel_size=3, padding=1, stride=1,
                          pool_kernel=2, pool_stride=2, use_bn=True, eps=1e-5):
    n, cin, h, w = x.shape
    cout = w1.shape[0]
    kh = kw = kernel_size
    # Only the configuration the module is used with: stride-1 'same' convs, 2x2/2 pool.
    assert stride == 1 and padding == (kernel_size - 1) // 2
    assert pool_kernel == 2 and pool_stride == 2 and h % 2 == 0 and w % 2 == 0

    wp = w + 2 * padding
    hwp = h * wp
    shift = padding * wp + padding
    l1 = (h + 2 * padding + 1) * wp
    lx = l1 + 2 * shift

    w1f, b1f = _fold_bn(w1, b1, g1, beta1, m1, v1, eps, use_bn)
    w2f, b2f = _fold_bn(w2, b2, g2, beta2, m2, v2, eps, use_bn)

    # (Cout, Cin, KH, KW) -> (Cout, KH*KW*Cin): single-matmul bf16 MXU operands,
    # tap-major / channel-minor to match the in-kernel sublane stacking order.
    w1t = w1f.transpose(0, 2, 3, 1).reshape(cout, kh * kw * cin).astype(jnp.bfloat16)
    w2t = w2f.transpose(0, 2, 3, 1).reshape(cout, kh * kw * cout).astype(jnp.bfloat16)
    b1c = b1f.reshape(cout, 1).astype(jnp.float32)
    b2c = b2f.reshape(cout, 1).astype(jnp.float32)

    # Interior mask of the padded-wide y1 layout: 1 on real conv1 outputs, 0 on all
    # padding / wrap-around positions, so masked-y1 is directly the padded conv2 input.
    q = jnp.arange(l1, dtype=jnp.int32)
    rr, cc = q // wp, q % wp
    m1w = (((rr >= padding) & (rr < padding + h) &
            (cc >= padding) & (cc < padding + w))
           .astype(jnp.float32).reshape(1, l1))

    # Free reshape (merges contiguous trailing dims); padding happens in-kernel.
    x3 = x.reshape(n, cin, h * w)

    kernel = _make_stack_encoder_kernel(cin=cin, cout=cout, kh=kh, kw=kw,
                                        h=h, w=w, padding=padding)

    trace_wide, pool_wide = pl.pallas_call(
        kernel,
        out_shape=(jax.ShapeDtypeStruct((n, cout, hwp), jnp.float32),
                   jax.ShapeDtypeStruct((n, cout, hwp), jnp.float32)),
        grid_spec=pltpu.PrefetchScalarGridSpec(
            num_scalar_prefetch=0,
            grid=(n,),   # one image per step; N>=2 keeps both v7x TensorCores busy.
            in_specs=[
                pl.BlockSpec((1, cin, h * w), lambda i: (i, 0, 0)),
                pl.BlockSpec((cout, kh * kw * cin), lambda i: (0, 0)),
                pl.BlockSpec((cout, 1), lambda i: (0, 0)),
                pl.BlockSpec((cout, kh * kw * cout), lambda i: (0, 0)),
                pl.BlockSpec((cout, 1), lambda i: (0, 0)),
                pl.BlockSpec((1, l1), lambda i: (0, 0)),
            ],
            out_specs=(
                pl.BlockSpec((1, cout, hwp), lambda i: (i, 0, 0)),
                pl.BlockSpec((1, cout, hwp), lambda i: (i, 0, 0)),
            ),
            scratch_shapes=[
                pltpu.VMEM((cin, lx), jnp.bfloat16),             # staged padded input
                pltpu.VMEM((kh * kw * cin, l1), jnp.bfloat16),   # conv1 stacked operand
                pltpu.VMEM((kh * kw * cout, hwp), jnp.bfloat16), # conv2 stacked operand
            ],
        ),
        compiler_params=pltpu.CompilerParams(
            dimension_semantics=("parallel",),
            vmem_limit_bytes=32 * 1024 * 1024,
        ),
    )(x3, w1t, b1c, w2t, b2c, m1w)

    # Wide -> NCHW. (A downstream consumer could take the wide/bf16 layouts directly
    # to skip this reslice; kept here to match the module's return contract.)
    x_trace = trace_wide.reshape(n, cout, h, wp)[:, :, :, :w]
    x_pool = pool_wide.reshape(n, cout, h, wp)[:, :, 0::2, 0::2][:, :, :, :w // 2]
    return x_pool, x_trace


# ----------------------------- plain-JAX reference -----------------------------
def _conv_bn_relu_ref(x, w, b, gamma, beta, mean, var, *, padding, use_bn=True,
                      eps=1e-5):
    y = lax.conv_general_dilated(
        x, w, window_strides=(1, 1),
        padding=((padding, padding), (padding, padding)),
        dimension_numbers=("NCHW", "OIHW", "NCHW"))
    y = y + b[None, :, None, None]
    if use_bn:
        sc = (gamma / jnp.sqrt(var + eps))[None, :, None, None]
        y = (y - mean[None, :, None, None]) * sc + beta[None, :, None, None]
    return jnp.maximum(y, 0.0)


def _stack_encoder_ref(x, w1, b1, g1, be1, m1, v1, w2, b2, g2, be2, m2, v2,
                       *, padding=1, use_bn=True, eps=1e-5):
    y1 = _conv_bn_relu_ref(x, w1, b1, g1, be1, m1, v1, padding=padding,
                           use_bn=use_bn, eps=eps)
    y2 = _conv_bn_relu_ref(y1, w2, b2, g2, be2, m2, v2, padding=padding,
                           use_bn=use_bn, eps=eps)
    pool = lax.reduce_window(y2, -jnp.inf, lax.max,
                             window_dimensions=(1, 1, 2, 2),
                             window_strides=(1, 1, 2, 2), padding="VALID")
    return pool, y2


if __name__ == "__main__":
    key = jax.random.PRNGKey(0)
    keys = jax.random.split(key, 13)

    N, Cin, H, W = 2, 4, 16, 16
    Cout, K = 8, 3

    x = jax.random.normal(keys[0], (N, Cin, H, W), jnp.float32)

    def conv_params(kw_key, kb_key, cin, cout, k):
        fan_in = cin * k * k
        bound = 1.0 / (fan_in ** 0.5)
        w = jax.random.uniform(kw_key, (cout, cin, k, k), jnp.float32, -bound, bound)
        b = jax.random.uniform(kb_key, (cout,), jnp.float32, -bound, bound)
        return w, b

    w1, b1 = conv_params(keys[1], keys[2], Cin, Cout, K)
    w2, b2 = conv_params(keys[3], keys[4], Cout, Cout, K)
    g1 = 1.0 + 0.1 * jax.random.normal(keys[5], (Cout,), jnp.float32)
    be1 = 0.1 * jax.random.normal(keys[6], (Cout,), jnp.float32)
    m1 = 0.1 * jax.random.normal(keys[7], (Cout,), jnp.float32)
    v1 = jnp.abs(1.0 + 0.1 * jax.random.normal(keys[8], (Cout,), jnp.float32))
    g2 = 1.0 + 0.1 * jax.random.normal(keys[9], (Cout,), jnp.float32)
    be2 = 0.1 * jax.random.normal(keys[10], (Cout,), jnp.float32)
    m2 = 0.1 * jax.random.normal(keys[11], (Cout,), jnp.float32)
    v2 = jnp.abs(1.0 + 0.1 * jax.random.normal(keys[12], (Cout,), jnp.float32))

    x_pool, x_trace = stack_encoder_forward(
        x, w1, b1, g1, be1, m1, v1, w2, b2, g2, be2, m2, v2,
        kernel_size=K, padding=1, stride=1, pool_kernel=2, pool_stride=2,
        use_bn=True)
    x_pool, x_trace = jax.block_until_ready((x_pool, x_trace))

    pool_ref, trace_ref = _stack_encoder_ref(
        x, w1, b1, g1, be1, m1, v1, w2, b2, g2, be2, m2, v2, padding=1)

    assert x_trace.shape == (N, Cout, H, W), x_trace.shape
    assert x_pool.shape == (N, Cout, H // 2, W // 2), x_pool.shape
    # bf16 matmul operands (f32 accumulation) -> slightly relaxed tolerance.
    err_t = float(jnp.max(jnp.abs(x_trace - trace_ref)))
    err_p = float(jnp.max(jnp.abs(x_pool - pool_ref)))
    assert jnp.allclose(x_trace, trace_ref, atol=5e-2, rtol=5e-2), err_t
    assert jnp.allclose(x_pool, pool_ref, atol=5e-2, rtol=5e-2), err_p

    print("KERNEL_OK")
</pallas_src>

<mosaic_0001>
module attributes {stable_mosaic.version = 11 : i64} {
  func.func @kernel(%arg0: i32, %arg1: memref<1x4x256xf32, #tpu.memory_space<vmem>>, %arg2: memref<8x36xbf16, #tpu.memory_space<vmem>>, %arg3: memref<8x1xf32, #tpu.memory_space<vmem>>, %arg4: memref<8x72xbf16, #tpu.memory_space<vmem>>, %arg5: memref<8x1xf32, #tpu.memory_space<vmem>>, %arg6: memref<1x342xf32, #tpu.memory_space<vmem>>, %arg7: memref<1x8x288xf32, #tpu.memory_space<vmem>>, %arg8: memref<1x8x288xf32, #tpu.memory_space<vmem>>, %arg9: memref<4x380xbf16, #tpu.memory_space<vmem>>, %arg10: memref<36x342xbf16, #tpu.memory_space<vmem>>, %arg11: memref<72x288xbf16, #tpu.memory_space<vmem>>) attributes {dimension_semantics = [#tpu.dimension_semantics<parallel>], iteration_bounds = array<i64: 2>, scalar_prefetch = 0 : i64, scratch_operands = 3 : i64, tpu.core_type = #tpu.core_type<tc>, window_params = [{transform_indices = @transform_0, window_bounds = array<i64: 1, 4, 256>}, {pipeline_mode = #tpu.pipeline_mode<synchronous>, transform_indices = @transform_1, window_bounds = array<i64: 8, 36>}, {pipeline_mode = #tpu.pipeline_mode<synchronous>, transform_indices = @transform_2, window_bounds = array<i64: 8, 1>}, {pipeline_mode = #tpu.pipeline_mode<synchronous>, transform_indices = @transform_3, window_bounds = array<i64: 8, 72>}, {pipeline_mode = #tpu.pipeline_mode<synchronous>, transform_indices = @transform_4, window_bounds = array<i64: 8, 1>}, {pipeline_mode = #tpu.pipeline_mode<synchronous>, transform_indices = @transform_5, window_bounds = array<i64: 1, 342>}, {transform_indices = @transform_6, window_bounds = array<i64: 1, 8, 288>}, {transform_indices = @transform_7, window_bounds = array<i64: 1, 8, 288>}]} {
    %cst = arith.constant 0.000000e+00 : bf16
    %0 = vector.broadcast %cst : bf16 to vector<4x380xbf16>
    %c0 = arith.constant 0 : index
    %c0_0 = arith.constant 0 : index
    %1 = vector.load %arg9[%c0, %c0_0] : memref<4x380xbf16, #tpu.memory_space<vmem>>, vector<4x380xbf16>
    tpu.vector_store %arg9[%c0, %c0_0], %0 {strides = array<i32>} : memref<4x380xbf16, #tpu.memory_space<vmem>>, vector<4x380xbf16>,
    %c0_1 = arith.constant 0 : index
    %c0_2 = arith.constant 0 : index
    %c0_3 = arith.constant 0 : index
    %2 = vector.load %arg1[%c0_1, %c0_2, %c0_3] : memref<1x4x256xf32, #tpu.memory_space<vmem>>, vector<1x4x16xf32>
    %3 = vector.shape_cast %2 : vector<1x4x16xf32> to vector<4x16xf32>
    %4 = arith.truncf %3 : vector<4x16xf32> to vector<4x16xbf16>
    %c0_4 = arith.constant 0 : index
    %c38 = arith.constant 38 : index
    %5 = vector.load %arg9[%c0_4, %c38] : memref<4x380xbf16, #tpu.memory_space<vmem>>, vector<4x16xbf16>
    tpu.vector_store %arg9[%c0_4, %c38], %4 {strides = array<i32>} : memref<4x380xbf16, #tpu.memory_space<vmem>>, vector<4x16xbf16>,
    %c0_5 = arith.constant 0 : index
    %c0_6 = arith.constant 0 : index
    %c16 = arith.constant 16 : index
    %6 = vector.load %arg1[%c0_5, %c0_6, %c16] : memref<1x4x256xf32, #tpu.memory_space<vmem>>, vector<1x4x16xf32>
    %7 = vector.shape_cast %6 : vector<1x4x16xf32> to vector<4x16xf32>
    %8 = arith.truncf %7 : vector<4x16xf32> to vector<4x16xbf16>
    %c0_7 = arith.constant 0 : index
    %c56 = arith.constant 56 : index
    %9 = vector.load %arg9[%c0_7, %c56] : memref<4x380xbf16, #tpu.memory_space<vmem>>, vector<4x16xbf16>
    tpu.vector_store %arg9[%c0_7, %c56], %8 {strides = array<i32>} : memref<4x380xbf16, #tpu.memory_space<vmem>>, vector<4x16xbf16>,
    %c0_8 = arith.constant 0 : index
    %c0_9 = arith.constant 0 : index
    %c32 = arith.constant 32 : index
    %10 = vector.load %arg1[%c0_8, %c0_9, %c32] : memref<1x4x256xf32, #tpu.memory_space<vmem>>, vector<1x4x16xf32>
    %11 = vector.shape_cast %10 : vector<1x4x16xf32> to vector<4x16xf32>
    %12 = arith.truncf %11 : vector<4x16xf32> to vector<4x16xbf16>
    %c0_10 = arith.constant 0 : index
    %c74 = arith.constant 74 : index
    %13 = vector.load %arg9[%c0_10, %c74] : memref<4x380xbf16, #tpu.memory_space<vmem>>, vector<4x16xbf16>
    tpu.vector_store %arg9[%c0_10, %c74], %12 {strides = array<i32>} : memref<4x380xbf16, #tpu.memory_space<vmem>>, vector<4x16xbf16>,
    %c0_11 = arith.constant 0 : index
    %c0_12 = arith.constant 0 : index
    %c48 = arith.constant 48 : index
    %14 = vector.load %arg1[%c0_11, %c0_12, %c48] : memref<1x4x256xf32, #tpu.memory_space<vmem>>, vector<1x4x16xf32>
    %15 = vector.shape_cast %14 : vector<1x4x16xf32> to vector<4x16xf32>
    %16 = arith.truncf %15 : vector<4x16xf32> to vector<4x16xbf16>
    %c0_13 = arith.constant 0 : index
    %c92 = arith.constant 92 : index
    %17 = vector.load %arg9[%c0_13, %c92] : memref<4x380xbf16, #tpu.memory_space<vmem>>, vector<4x16xbf16>
    tpu.vector_store %arg9[%c0_13, %c92], %16 {strides = array<i32>} : memref<4x380xbf16, #tpu.memory_space<vmem>>, vector<4x16xbf16>,
    %c0_14 = arith.constant 0 : index
    %c0_15 = arith.constant 0 : index
    %c64 = arith.constant 64 : index
    %18 = vector.load %arg1[%c0_14, %c0_15, %c64] : memref<1x4x256xf32, #tpu.memory_space<vmem>>, vector<1x4x16xf32>
    %19 = vector.shape_cast %18 : vector<1x4x16xf32> to vector<4x16xf32>
    %20 = arith.truncf %19 : vector<4x16xf32> to vector<4x16xbf16>
    %c0_16 = arith.constant 0 : index
    %c110 = arith.constant 110 : index
    %21 = vector.load %arg9[%c0_16, %c110] : memref<4x380xbf16, #tpu.memory_space<vmem>>, vector<4x16xbf16>
    tpu.vector_store %arg9[%c0_16, %c110], %20 {strides = array<i32>} : memref<4x380xbf16, #tpu.memory_space<vmem>>, vector<4x16xbf16>,
    %c0_17 = arith.constant 0 : index
    %c0_18 = arith.constant 0 : index
    %c80 = arith.constant 80 : index
    %22 = vector.load %arg1[%c0_17, %c0_18, %c80] : memref<1x4x256xf32, #tpu.memory_space<vmem>>, vector<1x4x16xf32>
    %23 = vector.shape_cast %22 : vector<1x4x16xf32> to vector<4x16xf32>
    %24 = arith.truncf %23 : vector<4x16xf32> to vector<4x16xbf16>
    %c0_19 = arith.constant 0 : index
    %c128 = arith.constant 128 : index
    %25 = vector.load %arg9[%c0_19, %c128] : memref<4x380xbf16, #tpu.memory_space<vmem>>, vector<4x16xbf16>
    tpu.vector_store %arg9[%c0_19, %c128], %24 {strides = array<i32>} : memref<4x380xbf16, #tpu.memory_space<vmem>>, vector<4x16xbf16>,
    %c0_20 = arith.constant 0 : index
    %c0_21 = arith.constant 0 : index
    %c96 = arith.constant 96 : index
    %26 = vector.load %arg1[%c0_20, %c0_21, %c96] : memref<1x4x256xf32, #tpu.memory_space<vmem>>, vector<1x4x16xf32>
    %27 = vector.shape_cast %26 : vector<1x4x16xf32> to vector<4x16xf32>
    %28 = arith.truncf %27 : vector<4x16xf32> to vector<4x16xbf16>
    %c0_22 = arith.constant 0 : index
    %c146 = arith.constant 146 : index
    %29 = vector.load %arg9[%c0_22, %c146] : memref<4x380xbf16, #tpu.memory_space<vmem>>, vector<4x16xbf16>
    tpu.vector_store %arg9[%c0_22, %c146], %28 {strides = array<i32>} : memref<4x380xbf16, #tpu.memory_space<vmem>>, vector<4x16xbf16>,
    %c0_23 = arith.constant 0 : index
    %c0_24 = arith.constant 0 : index
    %c112 = arith.constant 112 : index
    %30 = vector.load %arg1[%c0_23, %c0_24, %c112] : memref<1x4x256xf32, #tpu.memory_space<vmem>>, vector<1x4x16xf32>
    %31 = vector.shape_cast %30 : vector<1x4x16xf32> to vector<4x16xf32>
    %32 = arith.truncf %31 : vector<4x16xf32> to vector<4x16xbf16>
    %c0_25 = arith.constant 0 : index
    %c164 = arith.constant 164 : index
    %33 = vector.load %arg9[%c0_25, %c164] : memref<4x380xbf16, #tpu.memory_space<vmem>>, vector<4x16xbf16>
    tpu.vector_store %arg9[%c0_25, %c164], %32 {strides = array<i32>} : memref<4x380xbf16, #tpu.memory_space<vmem>>, vector<4x16xbf16>,
    %c0_26 = arith.constant 0 : index
    %c0_27 = arith.constant 0 : index
    %c128_28 = arith.constant 128 : index
    %34 = vector.load %arg1[%c0_26, %c0_27, %c128_28] : memref<1x4x256xf32, #tpu.memory_space<vmem>>, vector<1x4x16xf32>
    %35 = vector.shape_cast %34 : vector<1x4x16xf32> to vector<4x16xf32>
    %36 = arith.truncf %35 : vector<4x16xf32> to vector<4x16xbf16>
    %c0_29 = arith.constant 0 : index
    %c182 = arith.constant 182 : index
    %37 = vector.load %arg9[%c0_29, %c182] : memref<4x380xbf16, #tpu.memory_space<vmem>>, vector<4x16xbf16>
    tpu.vector_store %arg9[%c0_29, %c182], %36 {strides = array<i32>} : memref<4x380xbf16, #tpu.memory_space<vmem>>, vector<4x16xbf16>,
    %c0_30 = arith.constant 0 : index
    %c0_31 = arith.constant 0 : index
    %c144 = arith.constant 144 : index
    %38 = vector.load %arg1[%c0_30, %c0_31, %c144] : memref<1x4x256xf32, #tpu.memory_space<vmem>>, vector<1x4x16xf32>
    %39 = vector.shape_cast %38 : vector<1x4x16xf32> to vector<4x16xf32>
    %40 = arith.truncf %39 : vector<4x16xf32> to vector<4x16xbf16>
    %c0_32 = arith.constant 0 : index
    %c200 = arith.constant 200 : index
    %41 = vector.load %arg9[%c0_32, %c200] : memref<4x380xbf16, #tpu.memory_space<vmem>>, vector<4x16xbf16>
    tpu.vector_store %arg9[%c0_32, %c200], %40 {strides = array<i32>} : memref<4x380xbf16, #tpu.memory_space<vmem>>, vector<4x16xbf16>,
    %c0_33 = arith.constant 0 : index
    %c0_34 = arith.constant 0 : index
    %c160 = arith.constant 160 : index
    %42 = vector.load %arg1[%c0_33, %c0_34, %c160] : memref<1x4x256xf32, #tpu.memory_space<vmem>>, vector<1x4x16xf32>
    %43 = vector.shape_cast %42 : vector<1x4x16xf32> to vector<4x16xf32>
    %44 = arith.truncf %43 : vector<4x16xf32> to vector<4x16xbf16>
    %c0_35 = arith.constant 0 : index
    %c218 = arith.constant 218 : index
    %45 = vector.load %arg9[%c0_35, %c218] : memref<4x380xbf16, #tpu.memory_space<vmem>>, vector<4x16xbf16>
    tpu.vector_store %arg9[%c0_35, %c218], %44 {strides = array<i32>} : memref<4x380xbf16, #tpu.memory_space<vmem>>, vector<4x16xbf16>,
    %c0_36 = arith.constant 0 : index
    %c0_37 = arith.constant 0 : index
    %c176 = arith.constant 176 : index
    %46 = vector.load %arg1[%c0_36, %c0_37, %c176] : memref<1x4x256xf32, #tpu.memory_space<vmem>>, vector<1x4x16xf32>
    %47 = vector.shape_cast %46 : vector<1x4x16xf32> to vector<4x16xf32>
    %48 = arith.truncf %47 : vector<4x16xf32> to vector<4x16xbf16>
    %c0_38 = arith.constant 0 : index
    %c236 = arith.constant 236 : index
    %49 = vector.load %arg9[%c0_38, %c236] : memref<4x380xbf16, #tpu.memory_space<vmem>>, vector<4x16xbf16>
    tpu.vector_store %arg9[%c0_38, %c236], %48 {strides = array<i32>} : memref<4x380xbf16, #tpu.memory_space<vmem>>, vector<4x16xbf16>,
    %c0_39 = arith.constant 0 : index
    %c0_40 = arith.constant 0 : index
    %c192 = arith.constant 192 : index
    %50 = vector.load %arg1[%c0_39, %c0_40, %c192] : memref<1x4x256xf32, #tpu.memory_space<vmem>>, vector<1x4x16xf32>
    %51 = vector.shape_cast %50 : vector<1x4x16xf32> to vector<4x16xf32>
    %52 = arith.truncf %51 : vector<4x16xf32> to vector<4x16xbf16>
    %c0_41 = arith.constant 0 : index
    %c254 = arith.constant 254 : index
    %53 = vector.load %arg9[%c0_41, %c254] : memref<4x380xbf16, #tpu.memory_space<vmem>>, vector<4x16xbf16>
    tpu.vector_store %arg9[%c0_41, %c254], %52 {strides = array<i32>} : memref<4x380xbf16, #tpu.memory_space<vmem>>, vector<4x16xbf16>,
    %c0_42 = arith.constant 0 : index
    %c0_43 = arith.constant 0 : index
    %c208 = arith.constant 208 : index
    %54 = vector.load %arg1[%c0_42, %c0_43, %c208] : memref<1x4x256xf32, #tpu.memory_space<vmem>>, vector<1x4x16xf32>
    %55 = vector.shape_cast %54 : vector<1x4x16xf32> to vector<4x16xf32>
    %56 = arith.truncf %55 : vector<4x16xf32> to vector<4x16xbf16>
    %c0_44 = arith.constant 0 : index
    %c272 = arith.constant 272 : index
    %57 = vector.load %arg9[%c0_44, %c272] : memref<4x380xbf16, #tpu.memory_space<vmem>>, vector<4x16xbf16>
    tpu.vector_store %arg9[%c0_44, %c272], %56 {strides = array<i32>} : memref<4x380xbf16, #tpu.memory_space<vmem>>, vector<4x16xbf16>,
    %c0_45 = arith.constant 0 : index
    %c0_46 = arith.constant 0 : index
    %c224 = arith.constant 224 : index
    %58 = vector.load %arg1[%c0_45, %c0_46, %c224] : memref<1x4x256xf32, #tpu.memory_space<vmem>>, vector<1x4x16xf32>
    %59 = vector.shape_cast %58 : vector<1x4x16xf32> to vector<4x16xf32>
    %60 = arith.truncf %59 : vector<4x16xf32> to vector<4x16xbf16>
    %c0_47 = arith.constant 0 : index
    %c290 = arith.constant 290 : index
    %61 = vector.load %arg9[%c0_47, %c290] : memref<4x380xbf16, #tpu.memory_space<vmem>>, vector<4x16xbf16>
    tpu.vector_store %arg9[%c0_47, %c290], %60 {strides = array<i32>} : memref<4x380xbf16, #tpu.memory_space<vmem>>, vector<4x16xbf16>,
    %c0_48 = arith.constant 0 : index
    %c0_49 = arith.constant 0 : index
    %c240 = arith.constant 240 : index
    %62 = vector.load %arg1[%c0_48, %c0_49, %c240] : memref<1x4x256xf32, #tpu.memory_space<vmem>>, vector<1x4x16xf32>
    %63 = vector.shape_cast %62 : vector<1x4x16xf32> to vector<4x16xf32>
    %64 = arith.truncf %63 : vector<4x16xf32> to vector<4x16xbf16>
    %c0_50 = arith.constant 0 : index
    %c308 = arith.constant 308 : index
    %65 = vector.load %arg9[%c0_50, %c308] : memref<4x380xbf16, #tpu.memory_space<vmem>>, vector<4x16xbf16>
    tpu.vector_store %arg9[%c0_50, %c308], %64 {strides = array<i32>} : memref<4x380xbf16, #tpu.memory_space<vmem>>, vector<4x16xbf16>,
    %c0_51 = arith.constant 0 : index
    %c0_52 = arith.constant 0 : index
    %66 = vector.load %arg9[%c0_51, %c0_52] : memref<4x380xbf16, #tpu.memory_space<vmem>>, vector<4x380xbf16>
    %67 = vector.extract_strided_slice %66 {offsets = [0, 0], sizes = [4, 342], strides = [1, 1]} : vector<4x380xbf16> to vector<4x342xbf16>
    %c0_53 = arith.constant 0 : index
    %c0_54 = arith.constant 0 : index
    %68 = vector.load %arg10[%c0_53, %c0_54] : memref<36x342xbf16, #tpu.memory_space<vmem>>, vector<4x342xbf16>
    tpu.vector_store %arg10[%c0_53, %c0_54], %67 {strides = array<i32>} : memref<36x342xbf16, #tpu.memory_space<vmem>>, vector<4x342xbf16>,
    %69 = vector.extract_strided_slice %66 {offsets = [0, 1], sizes = [4, 342], strides = [1, 1]} : vector<4x380xbf16> to vector<4x342xbf16>
    %c4 = arith.constant 4 : index
    %c0_55 = arith.constant 0 : index
    %70 = vector.load %arg10[%c4, %c0_55] : memref<36x342xbf16, #tpu.memory_space<vmem>>, vector<4x342xbf16>
    tpu.vector_store %arg10[%c4, %c0_55], %69 {strides = array<i32>} : memref<36x342xbf16, #tpu.memory_space<vmem>>, vector<4x342xbf16>,
    %71 = vector.extract_strided_slice %66 {offsets = [0, 2], sizes = [4, 342], strides = [1, 1]} : vector<4x380xbf16> to vector<4x342xbf16>
    %c8 = arith.constant 8 : index
    %c0_56 = arith.constant 0 : index
    %72 = vector.load %arg10[%c8, %c0_56] : memref<36x342xbf16, #tpu.memory_space<vmem>>, vector<4x342xbf16>
    tpu.vector_store %arg10[%c8, %c0_56], %71 {strides = array<i32>} : memref<36x342xbf16, #tpu.memory_space<vmem>>, vector<4x342xbf16>,
    %73 = vector.extract_strided_slice %66 {offsets = [0, 18], sizes = [4, 342], strides = [1, 1]} : vector<4x380xbf16> to vector<4x342xbf16>
    %c12 = arith.constant 12 : index
    %c0_57 = arith.constant 0 : index
    %74 = vector.load %arg10[%c12, %c0_57] : memref<36x342xbf16, #tpu.memory_space<vmem>>, vector<4x342xbf16>
    tpu.vector_store %arg10[%c12, %c0_57], %73 {strides = array<i32>} : memref<36x342xbf16, #tpu.memory_space<vmem>>, vector<4x342xbf16>,
    %75 = vector.extract_strided_slice %66 {offsets = [0, 19], sizes = [4, 342], strides = [1, 1]} : vector<4x380xbf16> to vector<4x342xbf16>
    %c16_58 = arith.constant 16 : index
    %c0_59 = arith.constant 0 : index
    %76 = vector.load %arg10[%c16_58, %c0_59] : memref<36x342xbf16, #tpu.memory_space<vmem>>, vector<4x342xbf16>
    tpu.vector_store %arg10[%c16_58, %c0_59], %75 {strides = array<i32>} : memref<36x342xbf16, #tpu.memory_space<vmem>>, vector<4x342xbf16>,
    %77 = vector.extract_strided_slice %66 {offsets = [0, 20], sizes = [4, 342], strides = [1, 1]} : vector<4x380xbf16> to vector<4x342xbf16>
    %c20 = arith.constant 20 : index
    %c0_60 = arith.constant 0 : index
    %78 = vector.load %arg10[%c20, %c0_60] : memref<36x342xbf16, #tpu.memory_space<vmem>>, vector<4x342xbf16>
    tpu.vector_store %arg10[%c20, %c0_60], %77 {strides = array<i32>} : memref<36x342xbf16, #tpu.memory_space<vmem>>, vector<4x342xbf16>,
    %79 = vector.extract_strided_slice %66 {offsets = [0, 36], sizes = [4, 342], strides = [1, 1]} : vector<4x380xbf16> to vector<4x342xbf16>
    %c24 = arith.constant 24 : index
    %c0_61 = arith.constant 0 : index
    %80 = vector.load %arg10[%c24, %c0_61] : memref<36x342xbf16, #tpu.memory_space<vmem>>, vector<4x342xbf16>
    tpu.vector_store %arg10[%c24, %c0_61], %79 {strides = array<i32>} : memref<36x342xbf16, #tpu.memory_space<vmem>>, vector<4x342xbf16>,
    %81 = vector.extract_strided_slice %66 {offsets = [0, 37], sizes = [4, 342], strides = [1, 1]} : vector<4x380xbf16> to vector<4x342xbf16>
    %c28 = arith.constant 28 : index
    %c0_62 = arith.constant 0 : index
    %82 = vector.load %arg10[%c28, %c0_62] : memref<36x342xbf16, #tpu.memory_space<vmem>>, vector<4x342xbf16>
    tpu.vector_store %arg10[%c28, %c0_62], %81 {strides = array<i32>} : memref<36x342xbf16, #tpu.memory_space<vmem>>, vector<4x342xbf16>,
    %83 = vector.extract_strided_slice %66 {offsets = [0, 38], sizes = [4, 342], strides = [1, 1]} : vector<4x380xbf16> to vector<4x342xbf16>
    %c32_63 = arith.constant 32 : index
    %c0_64 = arith.constant 0 : index
    %84 = vector.load %arg10[%c32_63, %c0_64] : memref<36x342xbf16, #tpu.memory_space<vmem>>, vector<4x342xbf16>
    tpu.vector_store %arg10[%c32_63, %c0_64], %83 {strides = array<i32>} : memref<36x342xbf16, #tpu.memory_space<vmem>>, vector<4x342xbf16>,
    %c0_65 = arith.constant 0 : index
    %c0_66 = arith.constant 0 : index
    %85 = vector.load %arg2[%c0_65, %c0_66] : memref<8x36xbf16, #tpu.memory_space<vmem>>, vector<8x36xbf16>
    %c0_67 = arith.constant 0 : index
    %c0_68 = arith.constant 0 : index
    %86 = vector.load %arg10[%c0_67, %c0_68] : memref<36x342xbf16, #tpu.memory_space<vmem>>, vector<36x342xbf16>
    %cst_69 = arith.constant dense<0.000000e+00> : vector<8x342xf32>
    %87 = tpu.matmul %85, %86, %cst_69 {dimension_numbers = #tpu.dot_dimension_numbers<[1], [0], [0], [1], [0, 0, 1, 1], [], []>} : vector<8x36xbf16>, vector<36x342xbf16>, vector<8x342xf32> -> vector<8x342xf32>
    %c0_70 = arith.constant 0 : index
    %c0_71 = arith.constant 0 : index
    %88 = vector.load %arg3[%c0_70, %c0_71] : memref<8x1xf32, #tpu.memory_space<vmem>>, vector<8x1xf32>
    %89 = vector.broadcast %88 : vector<8x1xf32> to vector<8x342xf32>
    %90 = arith.addf %87, %89 : vector<8x342xf32>
    %cst_72 = arith.constant 0.000000e+00 : f32
    %91 = vector.broadcast %cst_72 : f32 to vector<8x342xf32>
    %92 = arith.maximumf %90, %91 : vector<8x342xf32>
    %c0_73 = arith.constant 0 : index
    %c0_74 = arith.constant 0 : index
    %93 = vector.load %arg6[%c0_73, %c0_74] : memref<1x342xf32, #tpu.memory_space<vmem>>, vector<1x342xf32>
    %94 = vector.broadcast %93 : vector<1x342xf32> to vector<8x342xf32>
    %95 = arith.mulf %92, %94 : vector<8x342xf32>
    %96 = arith.truncf %95 : vector<8x342xf32> to vector<8x342xbf16>
    %97 = vector.extract_strided_slice %96 {offsets = [0, 0], sizes = [8, 288], strides = [1, 1]} : vector<8x342xbf16> to vector<8x288xbf16>
    %c0_75 = arith.constant 0 : index
    %c0_76 = arith.constant 0 : index
    %98 = vector.load %arg11[%c0_75, %c0_76] : memref<72x288xbf16, #tpu.memory_space<vmem>>, vector<8x288xbf16>
    tpu.vector_store %arg11[%c0_75, %c0_76], %97 {strides = array<i32>} : memref<72x288xbf16, #tpu.memory_space<vmem>>, vector<8x288xbf16>,
    %99 = vector.extract_strided_slice %96 {offsets = [0, 1], sizes = [8, 288], strides = [1, 1]} : vector<8x342xbf16> to vector<8x288xbf16>
    %c8_77 = arith.constant 8 : index
    %c0_78 = arith.constant 0 : index
    %100 = vector.load %arg11[%c8_77, %c0_78] : memref<72x288xbf16, #tpu.memory_space<vmem>>, vector<8x288xbf16>
    tpu.vector_store %arg11[%c8_77, %c0_78], %99 {strides = array<i32>} : memref<72x288xbf16, #tpu.memory_space<vmem>>, vector<8x288xbf16>,
    %101 = vector.extract_strided_slice %96 {offsets = [0, 2], sizes = [8, 288], strides = [1, 1]} : vector<8x342xbf16> to vector<8x288xbf16>
    %c16_79 = arith.constant 16 : index
    %c0_80 = arith.constant 0 : index
    %102 = vector.load %arg11[%c16_79, %c0_80] : memref<72x288xbf16, #tpu.memory_space<vmem>>, vector<8x288xbf16>
    tpu.vector_store %arg11[%c16_79, %c0_80], %101 {strides = array<i32>} : memref<72x288xbf16, #tpu.memory_space<vmem>>, vector<8x288xbf16>,
    %103 = vector.extract_strided_slice %96 {offsets = [0, 18], sizes = [8, 288], strides = [1, 1]} : vector<8x342xbf16> to vector<8x288xbf16>
    %c24_81 = arith.constant 24 : index
    %c0_82 = arith.constant 0 : index
    %104 = vector.load %arg11[%c24_81, %c0_82] : memref<72x288xbf16, #tpu.memory_space<vmem>>, vector<8x288xbf16>
    tpu.vector_store %arg11[%c24_81, %c0_82], %103 {strides = array<i32>} : memref<72x288xbf16, #tpu.memory_space<vmem>>, vector<8x288xbf16>,
    %105 = vector.extract_strided_slice %96 {offsets = [0, 19], sizes = [8, 288], strides = [1, 1]} : vector<8x342xbf16> to vector<8x288xbf16>
    %c32_83 = arith.constant 32 : index
    %c0_84 = arith.constant 0 : index
    %106 = vector.load %arg11[%c32_83, %c0_84] : memref<72x288xbf16, #tpu.memory_space<vmem>>, vector<8x288xbf16>
    tpu.vector_store %arg11[%c32_83, %c0_84], %105 {strides = array<i32>} : memref<72x288xbf16, #tpu.memory_space<vmem>>, vector<8x288xbf16>,
    %107 = vector.extract_strided_slice %96 {offsets = [0, 20], sizes = [8, 288], strides = [1, 1]} : vector<8x342xbf16> to vector<8x288xbf16>
    %c40 = arith.constant 40 : index
    %c0_85 = arith.constant 0 : index
    %108 = vector.load %arg11[%c40, %c0_85] : memref<72x288xbf16, #tpu.memory_space<vmem>>, vector<8x288xbf16>
    tpu.vector_store %arg11[%c40, %c0_85], %107 {strides = array<i32>} : memref<72x288xbf16, #tpu.memory_space<vmem>>, vector<8x288xbf16>,
    %109 = vector.extract_strided_slice %96 {offsets = [0, 36], sizes = [8, 288], strides = [1, 1]} : vector<8x342xbf16> to vector<8x288xbf16>
    %c48_86 = arith.constant 48 : index
    %c0_87 = arith.constant 0 : index
    %110 = vector.load %arg11[%c48_86, %c0_87] : memref<72x288xbf16, #tpu.memory_space<vmem>>, vector<8x288xbf16>
    tpu.vector_store %arg11[%c48_86, %c0_87], %109 {strides = array<i32>} : memref<72x288xbf16, #tpu.memory_space<vmem>>, vector<8x288xbf16>,
    %111 = vector.extract_strided_slice %96 {offsets = [0, 37], sizes = [8, 288], strides = [1, 1]} : vector<8x342xbf16> to vector<8x288xbf16>
    %c56_88 = arith.constant 56 : index
    %c0_89 = arith.constant 0 : index
    %112 = vector.load %arg11[%c56_88, %c0_89] : memref<72x288xbf16, #tpu.memory_space<vmem>>, vector<8x288xbf16>
    tpu.vector_store %arg11[%c56_88, %c0_89], %111 {strides = array<i32>} : memref<72x288xbf16, #tpu.memory_space<vmem>>, vector<8x288xbf16>,
    %113 = vector.extract_strided_slice %96 {offsets = [0, 38], sizes = [8, 288], strides = [1, 1]} : vector<8x342xbf16> to vector<8x288xbf16>
    %c64_90 = arith.constant 64 : index
    %c0_91 = arith.constant 0 : index
    %114 = vector.load %arg11[%c64_90, %c0_91] : memref<72x288xbf16, #tpu.memory_space<vmem>>, vector<8x288xbf16>
    tpu.vector_store %arg11[%c64_90, %c0_91], %113 {strides = array<i32>} : memref<72x288xbf16, #tpu.memory_space<vmem>>, vector<8x288xbf16>,
    %c0_92 = arith.constant 0 : index
    %c0_93 = arith.constant 0 : index
    %115 = vector.load %arg4[%c0_92, %c0_93] : memref<8x72xbf16, #tpu.memory_space<vmem>>, vector<8x72xbf16>
    %c0_94 = arith.constant 0 : index
    %c0_95 = arith.constant 0 : index
    %116 = vector.load %arg11[%c0_94, %c0_95] : memref<72x288xbf16, #tpu.memory_space<vmem>>, vector<72x288xbf16>
    %cst_96 = arith.constant dense<0.000000e+00> : vector<8x288xf32>
    %117 = tpu.matmul %115, %116, %cst_96 {dimension_numbers = #tpu.dot_dimension_numbers<[1], [0], [0], [1], [0, 0, 1, 1], [], []>} : vector<8x72xbf16>, vector<72x288xbf16>, vector<8x288xf32> -> vector<8x288xf32>
    %c0_97 = arith.constant 0 : index
    %c0_98 = arith.constant 0 : index
    %118 = vector.load %arg5[%c0_97, %c0_98] : memref<8x1xf32, #tpu.memory_space<vmem>>, vector<8x1xf32>
    %119 = vector.broadcast %118 : vector<8x1xf32> to vector<8x288xf32>
    %120 = arith.addf %117, %119 : vector<8x288xf32>
    %cst_99 = arith.constant 0.000000e+00 : f32
    %121 = vector.broadcast %cst_99 : f32 to vector<8x288xf32>
    %122 = arith.maximumf %120, %121 : vector<8x288xf32>
    %c0_100 = arith.constant 0 : index
    %c0_101 = arith.constant 0 : index
    %c0_102 = arith.constant 0 : index
    %123 = vector.load %arg7[%c0_100, %c0_101, %c0_102] : memref<1x8x288xf32, #tpu.memory_space<vmem>>, vector<1x8x288xf32>
    %124 = vector.shape_cast %123 : vector<1x8x288xf32> to vector<8x288xf32>
    %125 = vector.shape_cast %122 : vector<8x288xf32> to vector<1x8x288xf32>
    tpu.vector_store %arg7[%c0_100, %c0_101, %c0_102], %125 {strides = array<i32>} : memref<1x8x288xf32, #tpu.memory_space<vmem>>, vector<1x8x288xf32>,
    %126 = vector.extract_strided_slice %122 {offsets = [0, 0], sizes = [8, 269], strides = [1, 1]} : vector<8x288xf32> to vector<8x269xf32>
    %127 = vector.extract_strided_slice %122 {offsets = [0, 1], sizes = [8, 269], strides = [1, 1]} : vector<8x288xf32> to vector<8x269xf32>
    %128 = vector.extract_strided_slice %122 {offsets = [0, 18], sizes = [8, 269], strides = [1, 1]} : vector<8x288xf32> to vector<8x269xf32>
    %129 = vector.extract_strided_slice %122 {offsets = [0, 19], sizes = [8, 269], strides = [1, 1]} : vector<8x288xf32> to vector<8x269xf32>
    %130 = arith.maximumf %126, %127 : vector<8x269xf32>
    %131 = arith.maximumf %128, %129 : vector<8x269xf32>
    %132 = arith.maximumf %130, %131 : vector<8x269xf32>
    %c0_103 = arith.constant 0 : index
    %c0_104 = arith.constant 0 : index
    %c0_105 = arith.constant 0 : index
    %133 = vector.load %arg8[%c0_103, %c0_104, %c0_105] : memref<1x8x288xf32, #tpu.memory_space<vmem>>, vector<1x8x269xf32>
    %134 = vector.shape_cast %133 : vector<1x8x269xf32> to vector<8x269xf32>
    %135 = vector.shape_cast %132 : vector<8x269xf32> to vector<1x8x269xf32>
    tpu.vector_store %arg8[%c0_103, %c0_104, %c0_105], %135 {strides = array<i32>} : memref<1x8x288xf32, #tpu.memory_space<vmem>>, vector<1x8x269xf32>,
    %cst_106 = arith.constant 0.000000e+00 : f32
    %136 = vector.broadcast %cst_106 : f32 to vector<8x19xf32>
    %c0_107 = arith.constant 0 : index
    %c0_108 = arith.constant 0 : index
    %c269 = arith.constant 269 : index
    %137 = vector.load %arg8[%c0_107, %c0_108, %c269] : memref<1x8x288xf32, #tpu.memory_space<vmem>>, vector<1x8x19xf32>
    %138 = vector.shape_cast %137 : vector<1x8x19xf32> to vector<8x19xf32>
    %139 = vector.shape_cast %136 : vector<8x19xf32> to vector<1x8x19xf32>
    tpu.vector_store %arg8[%c0_107, %c0_108, %c269], %139 {strides = array<i32>} : memref<1x8x288xf32, #tpu.memory_space<vmem>>, vector<1x8x19xf32>,
    return
  }
  func.func @transform_0(%arg0: i32) -> (i32, i32, i32) {
    %c0_i32 = arith.constant 0 : i32
    %c0_i32_0 = arith.constant 0 : i32
    %c0_i32_1 = arith.constant 0 : i32
    return %arg0, %c0_i32, %c0_i32_0 : i32, i32, i32
  }
  func.func @transform_1(%arg0: i32) -> (i32, i32) {
    %c0_i32 = arith.constant 0 : i32
    %c0_i32_0 = arith.constant 0 : i32
    %c0_i32_1 = arith.constant 0 : i32
    return %c0_i32, %c0_i32_0 : i32, i32
  }
  func.func @transform_2(%arg0: i32) -> (i32, i32) {
    %c0_i32 = arith.constant 0 : i32
    %c0_i32_0 = arith.constant 0 : i32
    %c0_i32_1 = arith.constant 0 : i32
    return %c0_i32, %c0_i32_0 : i32, i32
  }
  func.func @transform_3(%arg0: i32) -> (i32, i32) {
    %c0_i32 = arith.constant 0 : i32
    %c0_i32_0 = arith.constant 0 : i32
    %c0_i32_1 = arith.constant 0 : i32
    return %c0_i32, %c0_i32_0 : i32, i32
  }
  func.func @transform_4(%arg0: i32) -> (i32, i32) {
    %c0_i32 = arith.constant 0 : i32
    %c0_i32_0 = arith.constant 0 : i32
    %c0_i32_1 = arith.constant 0 : i32
    return %c0_i32, %c0_i32_0 : i32, i32
  }
  func.func @transform_5(%arg0: i32) -> (i32, i32) {
    %c0_i32 = arith.constant 0 : i32
    %c0_i32_0 = arith.constant 0 : i32
    %c0_i32_1 = arith.constant 0 : i32
    return %c0_i32, %c0_i32_0 : i32, i32
  }
  func.func @transform_6(%arg0: i32) -> (i32, i32, i32) {
    %c0_i32 = arith.constant 0 : i32
    %c0_i32_0 = arith.constant 0 : i32
    %c0_i32_1 = arith.constant 0 : i32
    return %arg0, %c0_i32, %c0_i32_0 : i32, i32, i32
  }
  func.func @transform_7(%arg0: i32) -> (i32, i32, i32) {
    %c0_i32 = arith.constant 0 : i32
    %c0_i32_0 = arith.constant 0 : i32
    %c0_i32_1 = arith.constant 0 : i32
    return %arg0, %c0_i32, %c0_i32_0 : i32, i32, i32
  }
}

</mosaic_0001>

<bundles_post_ra>
// kernel: stack_encoder_forward.1
= control target key start
LH: loop header
LB: loop body
LE: loop exit
PB: predicated region body
PF: predicated region fallthrough
CT: control target
= control target key end

     0   :  { %s1506_s24 = smov 0   ;;  %s1722_s0 = inlined_call_operand.vmem [shape: f32[2,4,256], index: 0, kind: input, shape index: {}]   ;;  %s1723_s1 = inlined_call_operand.vmem [shape: bf16[8,36], index: 1, kind: input, shape index: {}]   ;;  %s1724_s2 = inlined_call_operand.vmem [shape: f32[8,1], index: 2, kind: input, shape index: {}]   ;;  %s1725_s3 = inlined_call_operand.vmem [shape: bf16[8,72], index: 3, kind: input, shape index: {}]   ;;  %s1726_s4 = inlined_call_operand.vmem [shape: f32[8,1], index: 4, kind: input, shape index: {}]   ;;  %s1727_s5 = inlined_call_operand.vmem [shape: f32[1,342], index: 5, kind: input, shape index: {}]   ;;  %s1728_s6 = inlined_call_operand.vmem [shape: f32[2,8,288], index: 6, kind: output, shape index: {0}]   ;;  %s1729_s7 = inlined_call_operand.vmem [shape: f32[2,8,288], index: 7, kind: output, shape index: {1}]  }
   0x1 LB: > { %s1295_s25 = sadd.s32 4294967295, %s1436_s24   ;;  %p1299_p0 = scmp.ge.s32.totalorder %s1436_s24, 1  ;;  %s1436_s24 = sphi %s1506_s24, %s18_s24  }
   0x2   : > { %p240_p1 = scmp.lt.s32.totalorder %s1436_s24, 3 }
   0x4   : > { %p241_p2 = pnand %p1299_p0, %p240_p1 }
   0x5   : > { %p277_p3 = scmp.lt.s32.totalorder (!%p241_p2), %s1295_s25, 1  ;;  %v305_v0 = vlaneseq (!%p241_p2)  ;;  %vm293_vm0 = vcmask (!%p241_p2), 1041408   ;;  %vm294_vm1 = vcmask (!%p241_p2), 1043458   ;;  %v1438_v1 = vmov (!%p241_p2), 1983009808   ;;  %s1440_s30 = smov (!%p241_p2), 52  }
   0x6   : > { %244 = sbr.rel (%p241_p2) target bundleno = 1166 (0x48e), region = 44  ;;  %v303_v2 = vunpack.c.l.s4 (!%p241_p2), %v1438_v1  ;;  %vm295_vm2 = vmor (!%p241_p2), %vm294_vm1, %vm293_vm0  ;;  %vm296_vm3 = vcmask (!%p241_p2), 1012740   ;;  %v1439_v4 = vmov (!%p241_p2), 0   ;;  %s1441_s8 = smov (!%p241_p2), 48   ;;  %vm387_vm5 = vcmask (!%p241_p2), 123904  }
   0x7   : > { %v1517_v3 = vshrl.u32 (!%p241_p2), %v305_v0, 7  ;;  %vm297_vm4 = vmor (!%p241_p2), %vm296_vm3, %vm295_vm2  ;;  %782 = vmatprep.mubr.bf16.mxu0 (!%p241_p2), %v1439_v4  ;;  %1413 = vset.pattern.permute.xlu0 (!%p241_p2), %v1439_v4  ;;  %s1442_s9 = smov (!%p241_p2), 54   ;;  %s1443_s10 = smov (!%p241_p2), 50   ;;  %vm402_vm6 = vcmask (!%p241_p2), 271504   ;;  %vm417_vm7 = vcmask (!%p241_p2), 419104   ;;  %vm432_vm8 = vcmask (!%p241_p2), 566704  }
   0x8   : > { %v304_v5 = vunpack.c.0.s8 (!%p241_p2), %v303_v2  ;;  %298 = vst.msk [vmem:[#allocation2] sm:$0x3f] (!%p241_p2), %vm297_vm4, %v1439_v4  ;;  %s1444_s11 = smov (!%p241_p2), 62   ;;  %s1445_s12 = smov (!%p241_p2), 56   ;;  %vm447_vm9 = vcmask (!%p241_p2), 714304   ;;  %vm462_vm10 = vcmask (!%p241_p2), 861904  }
   0x9   : > { %s1446_s13 = smov (!%p241_p2), 58   ;;  %s1447_s14 = smov (!%p241_p2), 38   ;;  %vm312_vm11 = vcmask (!%p241_p2), 435504   ;;  %vm495_vm12 = vcmask (!%p241_p2), 1042416   ;;  %vm496_vm13 = vcmask (!%p241_p2), 109570   ;;  %vm492_vm14 = vcmask (!%p241_p2), 506880  }
   0xa   : > { %v1529_v6 = vsub.s32 (!%p241_p2), %v304_v5, %v1517_v3  ;;  %s1448_s15 = smov (!%p241_p2), 60   ;;  %s1449_s16 = smov (!%p241_p2), 40   ;;  %vm477_vm15 = vcmask (!%p241_p2), 1009504   ;;  %vm327_vm1 = vcmask (!%p241_p2), 583104   ;;  %vm497_vm2 = vmor (!%p241_p2), %vm496_vm13, %vm495_vm12  ;;  %vm342_vm3 = vcmask (!%p241_p2), 730704  }
   0xb   : > { %s1450_s17 = smov (!%p241_p2), 42   ;;  %s1451_s18 = smov (!%p241_p2), 64   ;;  %vm512_vm4 = vcmask (!%p241_p2), 255104   ;;  %vm580_vm12 = vcmask (!%p241_p2), 1043456   ;;  %vm582_vm13 = vcmask (!%p241_p2), 1039360  }
   0xc   : > { %s1452_s19 = smov (!%p241_p2), 44   ;;  %s1453_s20 = smov (!%p241_p2), 66  }
   0xd   : > { %s1731_s25 = smov (!%p277_p3, %s1295_s25), 1  ;;  %s1454_s21 = smov 46  }
   0xe   : > { %s1339_s26 = sshll.u32 %s1731_s25, 3  ;;  %s1455_s22 = smov 68  }
   0xf   : > { %s1526_s29 = scalar_lea.vmem %s1722_s0, %s1339_s26  ;;  %s1456_s23 = smov 126  }
  0x10   : > { %v404_v7 = vld [vmem:[%s1526_s29] sm:$0xf]  ;;  %v419_v9 = vld [vmem:[%s1526_s29 + $0x4] sm:$0xf]  ;;  %s1457_s26 = smov 127   ;;  %s1458_s27 = smov 109  }
  0x11   : > { %v374_v8 = vld [vmem:[%s1526_s29] sm:$0xf]  ;;  %v405_v10 = vpack.c.bf16 %v404_v7, %v404_v7  ;;  %v420_v12 = vpack.c.bf16 %v419_v9, %v419_v9  ;;  %v479_v14 = vld [vmem:[%s1526_s29 + $0x4] sm:$0xf]  ;;  %s1459_s28 = smov 110  }
  0x12   : > { %v375_v11 = vpack.c.bf16 %v374_v8, %v374_v8  ;;  %v389_v13 = vld [vmem:[%s1526_s29] sm:$0xf]  ;;  %v434_v16 = vld [vmem:[%s1526_s29 + $0x4] sm:$0xf]  ;;  %v480_v19 = vpack.c.bf16 %v479_v14, %v479_v14 }
  0x13   : > { %v390_v15 = vpack.c.bf16 %v389_v13, %v389_v13  ;;  %v413_v17 = vrot.slane %v405_v10, %v1529_v6  ;;  %v428_v20 = vrot.slane %v420_v12, %v1529_v6  ;;  %v435_v22 = vpack.c.bf16 %v434_v16, %v434_v16  ;;  %v449_v23 = vld [vmem:[%s1526_s29 + $0x4] sm:$0xf]  ;;  %v299_v24 = vld [vmem:[%s1526_s29] sm:$0xf] }
  0x14   : > { %v383_v18 = vrot.slane %v375_v11, %v1529_v6  ;;  %v450_v25 = vpack.c.bf16 %v449_v23, %v449_v23  ;;  %v488_v26 = vrot.slane %v480_v19, %v1529_v6  ;;  %v300_v28 = vpack.c.bf16 %v299_v24, %v299_v24  ;;  %v464_v29 = vld [vmem:[%s1526_s29 + $0x4] sm:$0xf]  ;;  %v314_v30 = vld [vmem:[%s1526_s29] sm:$0xf] }
  0x15   : > { %414 = vrot.lane.b32.xlu1 %v413_v17, %s1440_s30  ;;  %v398_v21 = vrot.slane %v390_v15, %v1529_v6  ;;  %v443_v27 = vrot.slane %v435_v22, %v1529_v6  ;;  %v465_v33 = vpack.c.bf16 %v464_v29, %v464_v29  ;;  %v315_v34 = vpack.c.bf16 %v314_v30, %v314_v30  ;;  %v329_v35 = vld [vmem:[%s1526_s29] sm:$0xf]  ;;  %v499_v36 = vld [vmem:[%s1526_s29 + $0x4] sm:$0xf]  ;;  %s1461_s30 = smov 108  }
  0x16   : > { %384 = vrot.lane.b32.xlu0 %v383_v18, %s1441_s8  ;;  %v458_v31 = vrot.slane %v450_v25, %v1529_v6  ;;  %v308_v32 = vrot.slane %v300_v28, %v1529_v6  ;;  %v330_v37 = vpack.c.bf16 %v329_v35, %v329_v35  ;;  %v500_v40 = vpack.c.bf16 %v499_v36, %v499_v36  ;;  %v344_v41 = vld [vmem:[%s1526_s29] sm:$0xf]  ;;  %v514_v42 = vld [vmem:[%s1526_s29 + $0x4] sm:$0xf]  ;;  %s1463_s8 = smov 91  }
  0x17   : > { %v473_v38 = vrot.slane %v465_v33, %v1529_v6  ;;  %v323_v39 = vrot.slane %v315_v34, %v1529_v6  ;;  %v345_v43 = vpack.c.bf16 %v344_v41, %v344_v41  ;;  %v515_v46 = vpack.c.bf16 %v514_v42, %v514_v42  ;;  %v359_v47 = vld [vmem:[%s1526_s29] sm:$0xf]  ;;  %v529_v48 = vld [vmem:[%s1526_s29 + $0x4] sm:$0xf]  ;;  %s1460_s29 = smov 92  }
  0x18   : > { %v338_v44 = vrot.slane %v330_v37, %v1529_v6  ;;  %v508_v45 = vrot.slane %v500_v40, %v1529_v6  ;;  %v360_v49 = vpack.c.bf16 %v359_v47, %v359_v47  ;;  %v530_v52 = vpack.c.bf16 %v529_v48, %v529_v48 }
  0x19   : > { %429 = vrot.lane.b32.xlu1 %v428_v20, %s1442_s9  ;;  %v353_v50 = vrot.slane %v345_v43, %v1529_v6  ;;  %v523_v51 = vrot.slane %v515_v46, %v1529_v6  ;;  %v1462_v18 = vmov 0.0   ;;  %s1465_s9 = smov 90  }
  0x1a   : > { %399 = vrot.lane.b32.xlu0 %v398_v21, %s1443_s10  ;;  %v368_v53 = vrot.slane %v360_v49, %v1529_v6  ;;  %v538_v54 = vrot.slane %v530_v52, %v1529_v6  ;;  %1352 = vmatprep.subr.bf16.mxu1 %v1462_v18 }
  0x1d   : > { %489 = vrot.lane.b32.xlu1 %v488_v26, %s1444_s11 }
  0x1e   : > { %444 = vrot.lane.b32.xlu0 %v443_v27, %s1445_s12 }
  0x21   : > { %309 = vrot.lane.b32.xlu1 %v308_v32, %s1447_s14 }
  0x22   : > { %459 = vrot.lane.b32.xlu0 %v458_v31, %s1446_s13 }
  0x25   : > { %324 = vrot.lane.b32.xlu1 %v323_v39, %s1449_s16 }
  0x26   : > { %474 = vrot.lane.b32.xlu0 %v473_v38, %s1448_s15 }
  0x29   : > { %509 = vrot.lane.b32.xlu1 %v508_v45, %s1451_s18 }
  0x2a   : > { %339 = vrot.lane.b32.xlu0 %v338_v44, %s1450_s17 }
  0x2d   : > { %524 = vrot.lane.b32.xlu1 %v523_v51, %s1453_s20  ;;  %s1376_s20 = smul.u32 24, %s1731_s25 }
  0x2e   : > { %354 = vrot.lane.b32.xlu0 %v353_v50, %s1452_s19 }
  0x31   : > { %539 = vrot.lane.b32.xlu1 %v538_v54, %s1455_s22 }
  0x32   : > { %369 = vrot.lane.b32.xlu0 %v368_v53, %s1454_s21 }
  0x87   : > { %v415_v55 = vpop.permute.xlu1 %414 }
  0x88   : > { %v385_v56 = vpop.permute.xlu0 %384 }
  0x89   : > { %388 = vst.msk [vmem:[#allocation2 + $0x2] sm:$0x3] %vm387_vm5, %v385_v56  ;;  %vm357_vm5 = vcmask 878304  }
  0x8b   : > { %v430_v57 = vpop.permute.xlu1 %429 }
  0x8c   : > { %v400_v58 = vpop.permute.xlu0 %399 }
  0x8d   : > { %403 = vst.msk [vmem:[#allocation2 + $0x2] sm:$0x3] %vm402_vm6, %v400_v58  ;;  %vm527_vm6 = vcmask 402704  }
  0x8e   : > { %418 = vst.msk [vmem:[#allocation2 + $0x2] sm:$0x3] %vm417_vm7, %v415_v55  ;;  %vm372_vm7 = vcmask 1025904  }
  0x8f   : > { %433 = vst.msk [vmem:[#allocation2 + $0x2] sm:$0x3] %vm432_vm8, %v430_v57  ;;  %v490_v59 = vpop.permute.xlu1 %489  ;;  %vm542_vm8 = vcmask 550304  }
  0x90   : > { %v445_v60 = vpop.permute.xlu0 %444  ;;  %v491_v63 = vrot.slane %v490_v59, 6 }
  0x91   : > { %448 = vst.msk [vmem:[#allocation2 + $0x2] sm:$0x3] %vm447_vm9, %v445_v60  ;;  %vm564_vm9 = vcmask 697344  }
  0x92   : > { %v493_v2 = vsel %vm492_vm14, %v491_v63, %v490_v59  ;;  %vm609_vm14 = vcmask 900096  }
  0x93   : > { %v310_v62 = vpop.permute.xlu1 %309 }
  0x94   : > { %v460_v61 = vpop.permute.xlu0 %459  ;;  %313 = vst.msk [vmem:[#allocation2] sm:$0x3] %vm312_vm11, %v310_v62  ;;  %vm587_vm11 = vcmask 699394  }
  0x95   : > { %463 = vst.msk [vmem:[#allocation2 + $0x2] sm:$0x3] %vm462_vm10, %v460_v61  ;;  %vm1464_vm10 = vmmov 0  }
  0x96   : > { %1358 = vmatprep.mubr.msk.bf16.mxu1 %vm1464_vm10, %v1462_v18 }
  0x97   : > { %v325_v1 = vpop.permute.xlu1 %324 }
  0x98   : > { %v475_v0 = vpop.permute.xlu0 %474  ;;  %328 = vst.msk [vmem:[#allocation2] sm:$0x3] %vm327_vm1, %v325_v1  ;;  %vm635_vm1 = vcmask 883712  }
  0x99   : > { %478 = vst.msk [vmem:[#allocation2 + $0x2] sm:$0x3] %vm477_vm15, %v475_v0  ;;  %vm596_vm15 = vcmask 1031168  }
  0x9a   : > { %498 = vst.msk [vmem:[#allocation2 + $0x2] sm:$0xf] %vm497_vm2, %v493_v2  ;;  %vm622_vm2 = vcmask 891904  }
  0x9b   : > { %v510_v7 = vpop.permute.xlu1 %509 }
  0x9c   : > { %v340_v5 = vpop.permute.xlu0 %339  ;;  %513 = vst.msk [vmem:[#allocation2 + $0x4] sm:$0x3] %vm512_vm4, %v510_v7  ;;  %vm648_vm4 = vcmask 752640  }
  0x9d   : > { %343 = vst.msk [vmem:[#allocation2] sm:$0x3] %vm342_vm3, %v340_v5  ;;  %vm661_vm3 = vcmask 744448  }
  0x9f   : > { %v525_v9 = vpop.permute.xlu1 %524 }
  0xa0   : > { %v355_v8 = vpop.permute.xlu0 %354  ;;  %528 = vst.msk [vmem:[#allocation2 + $0x4] sm:$0x3] %vm527_vm6, %v525_v9  ;;  %vm737_vm6 = vcmask 293888  }
  0xa1   : > { %358 = vst.msk [vmem:[#allocation2] sm:$0x3] %vm357_vm5, %v355_v8  ;;  %vm674_vm5 = vcmask 736256  }
  0xa3   : > { %v540_v11 = vpop.permute.xlu1 %539 }
  0xa4   : > { %v370_v10 = vpop.permute.xlu0 %369  ;;  %543 = vst.msk [vmem:[#allocation2 + $0x4] sm:$0x3] %vm542_vm8, %v540_v11  ;;  %vm1163_vm8 = vcmask 261120  }
  0xa5   : > { %373 = vst.msk [vmem:[#allocation2] sm:$0x3] %vm372_vm7, %v370_v10  ;;  %vm1063_vm7 = vcmask 588800  }
  0xac   : > { %v544_v12 = vld [vmem:[#allocation2] sm:$0x3f] }
  0xad   : > { %1304 = vst.sshfl [vmem:[#allocation3] sm:$0xf pattern:$0x76325410] %v544_v12  ;;  %v553_v13 = vrot.slane %v544_v12, %v1529_v6  ;;  %v546_v14 = vcombine.high %v544_v12, %v544_v12  ;;  %v566_v16 = vcombine.low %v544_v12, %v544_v12 }
  0xaf   : > { %589 = vrot.lane.b32.xlu0 %v553_v13, %s1456_s23  ;;  %576 = vrot.lane.b32.xlu1 %v553_v13, %s1457_s26  ;;  %v560_v15 = vrot.slane %v546_v14, %v1529_v6  ;;  %v573_v17 = vrot.slane %v566_v16, %v1529_v6  ;;  %v691_v6 = vld [vmem:[%s1724_s2] sm:$0xff] }
  0xb1   : > { %565 = vst.msk [vmem:[#allocation3 + $0x8] sm:$0x3] %vm564_vm9, %v560_v15 }
  0xb3   : > { %615 = vrot.lane.b32.xlu0 %v553_v13, %s1458_s27  ;;  %604 = vrot.lane.b32.xlu1 %v553_v13, %s1459_s28 }
  0xb7   : > { %641 = vrot.lane.b32.xlu0 %v553_v13, %s1460_s29  ;;  %630 = vrot.lane.b32.xlu1 %v553_v13, %s1461_s30 }
  0xbb   : > { %574 = vrot.lane.b32.xlu0 %v573_v17, %s1457_s26  ;;  %656 = vrot.lane.b32.xlu1 %v553_v13, %s1463_s8 }
  0xbf   : > { %602 = vrot.lane.b32.xlu0 %v573_v17, %s1459_s28  ;;  %591 = vrot.lane.b32.xlu1 %v560_v15, %s1456_s23 }
  0xc3   : > { %628 = vrot.lane.b32.xlu0 %v573_v17, %s1461_s30  ;;  %617 = vrot.lane.b32.xlu1 %v560_v15, %s1458_s27 }
  0xc7   : > { %654 = vrot.lane.b32.xlu0 %v573_v17, %s1463_s8  ;;  %643 = vrot.lane.b32.xlu1 %v560_v15, %s1460_s29 }
  0xcb   : > { %667 = vrot.lane.b32.xlu0 %v553_v13, %s1465_s9  ;;  %669 = vrot.lane.b32.xlu1 %v560_v15, %s1465_s9  ;;  %v680_v15 = vld [vmem:[%s1723_s1] sm:$0xf] }
  0xcf   : > { %694 = vperm.xlu0 %1413, %v691_v6  }
 0x121   : > { %v590_v19 = vpop.permute.xlu0 %589  ;;  %v577_v20 = vpop.permute.xlu1 %576 }
 0x122   : > { %588 = vst.msk [vmem:[#allocation3 + $0x8] sm:$0xc] %vm587_vm11, %v577_v20  ;;  %v579_v27 = vrot.slane %v577_v20, 4  ;;  %v593_v33 = vrot.slane %v590_v19, 4 }
 0x125   : > { %v616_v21 = vpop.permute.xlu0 %615  ;;  %v605_v22 = vpop.permute.xlu1 %604 }
 0x126   : > { %614 = vst.msk [vmem:[#allocation3 + $0x14] sm:$0xc] %vm587_vm11, %v605_v22  ;;  %v607_v34 = vrot.slane %v605_v22, 4  ;;  %v619_v43 = vrot.slane %v616_v21, 4 }
 0x129   : > { %v642_v23 = vpop.permute.xlu0 %641  ;;  %v631_v24 = vpop.permute.xlu1 %630 }
 0x12a   : > { %640 = vst.msk [vmem:[#allocation3 + $0x20] sm:$0xc] %vm587_vm11, %v631_v24  ;;  %v633_v44 = vrot.slane %v631_v24, 4  ;;  %v645_v54 = vrot.slane %v642_v23, 4 }
 0x12d   : > { %v575_v25 = vpop.permute.xlu0 %574  ;;  %v657_v26 = vpop.permute.xlu1 %656 }
 0x12e   : > { %v578_v28 = vrot.slane %v575_v25, 4  ;;  %666 = vst.msk [vmem:[#allocation3 + $0x2c] sm:$0xc] %vm587_vm11, %v657_v26  ;;  %v659_v55 = vrot.slane %v657_v26, 4  ;;  %v838_v26 = vsub.s32 0, %v1517_v3 }
 0x130   : > { %v581_v29 = vsel %vm580_vm12, %v578_v28, %v579_v27  ;;  %v842_v28 = vsub.s32 1, %v1517_v3 }
 0x131   : > { %v583_v30 = vsel %vm582_vm13, %v575_v25, %v581_v29  ;;  %v603_v31 = vpop.permute.xlu0 %602  ;;  %v592_v32 = vpop.permute.xlu1 %591 }
 0x132   : > { %586 = vst [vmem:[#allocation3] sm:$0xcc] %v583_v30  ;;  %v606_v35 = vrot.slane %v603_v31, 4  ;;  %v594_v36 = vrot.slane %v592_v32, 4  ;;  %601 = vst.msk [vmem:[#allocation3 + $0x14] sm:$0x3] %vm564_vm9, %v592_v32 }
 0x134   : > { %v608_v37 = vsel %vm580_vm12, %v606_v35, %v607_v34  ;;  %v595_v38 = vsel %vm580_vm12, %v593_v33, %v594_v36 }
 0x135   : > { %v610_v39 = vsel %vm609_vm14, %v603_v31, %v608_v37  ;;  %v597_v40 = vsel %vm596_vm15, %v590_v19, %v595_v38  ;;  %v629_v41 = vpop.permute.xlu0 %628  ;;  %v618_v42 = vpop.permute.xlu1 %617  ;;  %v846_v19 = vsub.s32 2, %v1517_v3 }
 0x136   : > { %613 = vst [vmem:[#allocation3 + $0xc] sm:$0xcc] %v610_v39  ;;  %600 = vst [vmem:[#allocation3 + $0xc] sm:$0x33] %v597_v40  ;;  %v632_v45 = vrot.slane %v629_v41, 4  ;;  %v620_v46 = vrot.slane %v618_v42, 4 }
 0x137   : > { %627 = vst.msk [vmem:[#allocation3 + $0x20] sm:$0x3] %vm564_vm9, %v618_v42 }
 0x138   : > { %v634_v47 = vsel %vm580_vm12, %v632_v45, %v633_v44  ;;  %v621_v48 = vsel %vm580_vm12, %v619_v43, %v620_v46  ;;  %v985_v44 = vld [vmem:[%s1726_s4] sm:$0xff] }
 0x139   : > { %v636_v49 = vsel %vm635_vm1, %v629_v41, %v634_v47  ;;  %v623_v50 = vsel %vm622_vm2, %v616_v21, %v621_v48  ;;  %v655_v51 = vpop.permute.xlu0 %654  ;;  %v644_v52 = vpop.permute.xlu1 %643  ;;  %v1414_v53 = vld [vmem:[#allocation3 + $0x8] ss:$12 sps:$4 sm:$0xff]   ;;  %v834_v21 = vld [vmem:[%s1727_s5] sm:$0x7] }
 0x13a   : > { %639 = vst [vmem:[#allocation3 + $0x18] sm:$0xcc] %v636_v49  ;;  %626 = vst [vmem:[#allocation3 + $0x18] sm:$0x33] %v623_v50  ;;  %v658_v56 = vrot.slane %v655_v51, 4  ;;  %v646_v57 = vrot.slane %v644_v52, 4  ;;  %1353 = vmatpush3.bf16.msra.mxu1 %v1414_v53  ;;  %v847_v24 = vrot.slane %v834_v21, %v846_v19  ;;  %v839_v33 = vrot.slane %v834_v21, %v838_v26 }
 0x13b   : > { %653 = vst.msk [vmem:[#allocation3 + $0x2c] sm:$0x3] %vm564_vm9, %v644_v52  ;;  %1354 = vmatprep.subr.bf16.mxu1 %v1462_v18  ;;  %v843_v36 = vrot.slane %v834_v21, %v842_v28 }
 0x13c   : > { %v660_v58 = vsel %vm580_vm12, %v658_v56, %v659_v55  ;;  %v647_v59 = vsel %vm580_vm12, %v645_v54, %v646_v57 }
 0x13d   : > { %v662_v60 = vsel %vm661_vm3, %v655_v51, %v660_v58  ;;  %v649_v61 = vsel %vm648_vm4, %v642_v23, %v647_v59  ;;  %v668_v62 = vpop.permute.xlu0 %667  ;;  %v670_v63 = vpop.permute.xlu1 %669  ;;  %v1415_v0 = vld [vmem:[#allocation3 + $0x4] ss:$12 sps:$4 sm:$0xff]   ;;  %v1417_v1 = vld [vmem:[#allocation3] ss:$12 sps:$4 sm:$0xff]  }
 0x13e   : > { %665 = vst [vmem:[#allocation3 + $0x24] sm:$0xcc] %v662_v60  ;;  %652 = vst [vmem:[#allocation3 + $0x24] sm:$0x33] %v649_v61  ;;  %v671_v2 = vrot.slane %v668_v62, 4  ;;  %v672_v5 = vrot.slane %v670_v63, 4  ;;  %750 = vmatprep.subr.bf16.mxu0 %v1415_v0 }
 0x13f   : > { %679 = vst.msk [vmem:[#allocation3 + $0x38] sm:$0x3] %vm564_vm9, %v670_v63  ;;  %751 = vmatpush1.bf16.msra.mxu0 %v1417_v1  ;;  %vm1203_vm9 = vcmask 105472  }
 0x140   : > { %v673_v7 = vsel %vm580_vm12, %v671_v2, %v672_v5 }
 0x141   : > { %v675_v8 = vsel %vm674_vm5, %v668_v62, %v673_v7 }
 0x142   : > { %v1418_v9 = vld [vmem:[#allocation3 + $0x20] ss:$12 sps:$4 sm:$0xff]   ;;  %678 = vst [vmem:[#allocation3 + $0x30] sm:$0x33] %v675_v8 }
 0x143   : > { %1355 = vmatpush3.bf16.msra.mxu1 %v1418_v9 }
 0x144   : > { %1356 = vmatprep.subr.bf16.mxu1 %v1462_v18 }
 0x145   : > { %v1419_v10 = vld [vmem:[#allocation3 + $0x1c] ss:$12 sps:$4 sm:$0xff]   ;;  %v1421_v11 = vld [vmem:[#allocation3 + $0x18] ss:$12 sps:$4 sm:$0xff]  }
 0x146   : > { %v1422_v12 = vld [vmem:[#allocation3 + $0x38] ss:$0 sps:$4 sm:$0x33]   ;;  %752 = vmatprep.subr.bf16.mxu0 %v1419_v10 }
 0x147   : > { %753 = vmatpush1.bf16.msra.mxu0 %v1421_v11  ;;  %v748_v13 = vsel %vm293_vm0, %v1422_v12, 0 }
 0x148   : > { %1357 = vmatpush3.bf16.msra.mxu1 %v748_v13 }
 0x149   : > { %v689_v14 = vld [vmem:[#allocation3 + $0x30] sm:$0x33]  ;;  %1362 = vmatprep.subr.bf16.mxu1 %v1462_v18 }
 0x14a   : > { %v1312_v16 = vcombine.high %v689_v14, %v689_v14  ;;  %v1311_v17 = vcombine.low %v689_v14, %v689_v14 }
 0x14b   : > { %1359 = vmatmul.mubr.msk.bf16.vlgmr.msra.gmra.mrb[0].mxu1 %vm737_vm6, %v680_v15 }
 0x14c   : > { %1314 = vmatprep.subr.msk.bf16.mxu0 %vm293_vm0, %v1312_v16  ;;  %v742_v6 = vsel %vm293_vm0, %v1311_v17, 0  ;;  %1372 = vmatprep.mubr.msk.bf16.mxu1 %vm1464_vm10, %v1462_v18  ;;  %vm868_vm0 = vcmask 257024   ;;  %vm1205_vm10 = vcmask 261224  }
 0x14d   : > { %755 = vmatpush1.bf16.msra.mxu0 %v742_v6 }
 0x14e   : > { %v695_v20 = vpop.permute.xlu0 %694 }
 0x150   : > { %1315 = vmatmul.mubr.msk.bf16.vlgmr.msra.gmra.mrb[0].mxu0 %vm737_vm6, %v680_v15 }
 0x151   : > { %1109 = vmatprep.mubr.bf16.mxu0 %v1439_v4 }
 0x21e   : > { %v825_v22 = vpop.f32.mrb[0].mxu1 }
 0x21f   : > { %v826_v23 = vadd.f32 %v825_v22, %v695_v20  ;;  %v1360_v25 = vpop.f32.mrb[1].mxu1 }
 0x220   : > { %v828_v27 = vpop.f32.mrb[2].mxu1 }
 0x221   : > { %v833_v29 = vmax.f32 %v826_v23, 0.0  ;;  %v1361_v30 = vpop.f32.mrb[3].mxu1 }
 0x223   : > { %v784_v31 = vpop.f32.mrb[0].mxu0  ;;  %v853_v4 = vmul.f32 %v847_v24, %v833_v29 }
 0x224   : > { %v785_v32 = vadd.f32 %v784_v31, %v695_v20  ;;  %v786_v34 = vpop.f32.mrb[1].mxu0 }
 0x225   : > { %v787_v35 = vadd.f32 %v786_v34, %v695_v20  ;;  %v788_v37 = vpop.f32.mrb[2].mxu0  ;;  %v1341_v38 = vpack.c.bf16 %v853_v4, %v853_v4 }
 0x226   : > { %v831_v39 = vmax.f32 %v785_v32, 0.0  ;;  %v789_v40 = vpop.f32.mrb[3].mxu0 }
 0x227   : > { %v832_v41 = vmax.f32 %v787_v35, 0.0  ;;  %872 = vrot.lane.b32.xlu1 %v1341_v38, %s1457_s26  ;;  %869 = vst.msk [vmem:[#allocation4 + $0x8] sm:$0xf] %vm868_vm0, %v1341_v38 }
 0x228   : > { %v851_v42 = vmul.f32 %v839_v33, %v831_v39 }
 0x229   : > { %v852_v3 = vmul.f32 %v843_v36, %v832_v41 }
 0x22b   : > { %v1633_v43 = vpack.c.bf16 %v852_v3, %v851_v42  ;;  %884 = vrot.lane.b32.xlu1 %v1341_v38, %s1456_s23 }
 0x22d   : > { %882 = vrot.lane.b32.xlu0 %v1633_v43, %s1456_s23  ;;  %s286_s23 = scalar_lea.vmem %s1728_s6, %s1376_s20 }
 0x22f   : > { %896 = vrot.lane.b32.xlu1 %v1341_v38, %s1459_s28 }
 0x231   : > { %894 = vrot.lane.b32.xlu0 %v1633_v43, %s1459_s28 }
 0x233   : > { %908 = vrot.lane.b32.xlu1 %v1341_v38, %s1458_s27 }
 0x235   : > { %906 = vrot.lane.b32.xlu0 %v1633_v43, %s1458_s27 }
 0x237   : > { %870 = vrot.lane.b32.xlu1 %v1633_v43, %s1457_s26 }
 0x239   : > { %918 = vrot.lane.b32.xlu0 %v1633_v43, %s1461_s30 }
 0x23b   : > { %920 = vrot.lane.b32.xlu1 %v1341_v38, %s1461_s30 }
 0x23d   : > { %930 = vrot.lane.b32.xlu0 %v1633_v43, %s1460_s29 }
 0x23f   : > { %932 = vrot.lane.b32.xlu1 %v1341_v38, %s1460_s29  ;;  %s291_s29 = scalar_lea.vmem %s1729_s7, %s1376_s20 }
 0x241   : > { %942 = vrot.lane.b32.xlu0 %v1633_v43, %s1463_s8 }
 0x243   : > { %944 = vrot.lane.b32.xlu1 %v1341_v38, %s1463_s8 }
 0x245   : > { %954 = vrot.lane.b32.xlu0 %v1633_v43, %s1465_s9 }
 0x247   : > { %956 = vrot.lane.b32.xlu1 %v1341_v38, %s1465_s9 }
 0x249   : > { %988 = vperm.xlu0 %1413, %v985_v44   ;;  %v966_v44 = vld [vmem:[%s1725_s3] sm:$0xf] }
 0x299   : > { %v873_v45 = vpop.permute.xlu1 %872 }
 0x29a   : > { %881 = vst.msk [vmem:[#allocation4 + $0x14] sm:$0xf] %vm868_vm0, %v873_v45  ;;  %v875_v2 = vrot.slane %v873_v45, 4 }
 0x29d   : > { %v885_v46 = vpop.permute.xlu1 %884 }
 0x29e   : > { %893 = vst.msk [vmem:[#allocation4 + $0x20] sm:$0xf] %vm868_vm0, %v885_v46  ;;  %v887_v48 = vrot.slane %v885_v46, 4 }
 0x29f   : > { %v883_v47 = vpop.permute.xlu0 %882 }
 0x2a0   : > { %v886_v49 = vrot.slane %v883_v47, 4 }
 0x2a1   : > { %v897_v51 = vpop.permute.xlu1 %896  ;;  %v1425_v52 = vld [vmem:[#allocation4 + $0x8] ss:$12 sps:$4 sm:$0xff]  }
 0x2a2   : > { %v888_v50 = vsel %vm580_vm12, %v886_v49, %v887_v48  ;;  %905 = vst.msk [vmem:[#allocation4 + $0x2c] sm:$0xf] %vm868_vm0, %v897_v51  ;;  %v899_v55 = vrot.slane %v897_v51, 4  ;;  %1363 = vmatpush3.bf16.msra.mxu1 %v1425_v52 }
 0x2a3   : > { %v889_v53 = vsel %vm596_vm15, %v883_v47, %v888_v50  ;;  %v895_v54 = vpop.permute.xlu0 %894  ;;  %1364 = vmatprep.subr.bf16.mxu1 %v1462_v18 }
 0x2a4   : > { %v898_v56 = vrot.slane %v895_v54, 4 }
 0x2a5   : > { %v909_v58 = vpop.permute.xlu1 %908 }
 0x2a6   : > { %v900_v57 = vsel %vm580_vm12, %v898_v56, %v899_v55  ;;  %917 = vst.msk [vmem:[#allocation4 + $0x38] sm:$0xf] %vm868_vm0, %v909_v58  ;;  %v911_v61 = vrot.slane %v909_v58, 4 }
 0x2a7   : > { %v901_v59 = vsel %vm609_vm14, %v895_v54, %v900_v57  ;;  %v907_v60 = vpop.permute.xlu0 %906 }
 0x2a8   : > { %v910_v62 = vrot.slane %v907_v60, 4  ;;  %v1323_v6 = vcombine.high %v889_v53, %v901_v59  ;;  %v1322_v24 = vcombine.low %v889_v53, %v901_v59 }
 0x2a9   : > { %v871_v0 = vpop.permute.xlu1 %870  ;;  %v1426_v1 = vld [vmem:[#allocation4 + $0x20] ss:$12 sps:$4 sm:$0xff]  }
 0x2aa   : > { %v912_v63 = vsel %vm580_vm12, %v910_v62, %v911_v61  ;;  %v874_v7 = vrot.slane %v871_v0, 4  ;;  %1365 = vmatpush3.bf16.msra.mxu1 %v1426_v1 }
 0x2ab   : > { %v913_v5 = vsel %vm622_vm2, %v907_v60, %v912_v63  ;;  %v919_v8 = vpop.permute.xlu0 %918  ;;  %1366 = vmatprep.subr.bf16.mxu1 %v1462_v18 }
 0x2ac   : > { %v876_v9 = vsel %vm580_vm12, %v874_v7, %v875_v2  ;;  %v922_v12 = vrot.slane %v919_v8, 4 }
 0x2ad   : > { %v877_v10 = vsel %vm582_vm13, %v871_v0, %v876_v9  ;;  %v921_v11 = vpop.permute.xlu1 %920 }
 0x2ae   : > { %v923_v13 = vrot.slane %v921_v11, 4  ;;  %929 = vst.msk [vmem:[#allocation4 + $0x44] sm:$0xf] %vm868_vm0, %v921_v11  ;;  %v1319_v15 = vcombine.low %v1633_v43, %v877_v10  ;;  %v1320_v16 = vcombine.high %v1633_v43, %v877_v10 }
 0x2af   : > { %v931_v14 = vpop.permute.xlu0 %930 }
 0x2b0   : > { %v924_v17 = vsel %vm580_vm12, %v922_v12, %v923_v13  ;;  %1077 = vmatprep.subr.bf16.mxu0 %v1320_v16  ;;  %v934_v21 = vrot.slane %v931_v14, 4 }
 0x2b1   : > { %v925_v19 = vsel %vm635_vm1, %v919_v8, %v924_v17  ;;  %v933_v20 = vpop.permute.xlu1 %932  ;;  %1078 = vmatpush1.bf16.msra.mxu0 %v1319_v15 }
 0x2b2   : > { %v935_v22 = vrot.slane %v933_v20, 4  ;;  %941 = vst.msk [vmem:[#allocation4 + $0x50] sm:$0xf] %vm868_vm0, %v933_v20  ;;  %1079 = vmatprep.subr.bf16.mxu0 %v1323_v6  ;;  %v1326_v26 = vcombine.high %v913_v5, %v925_v19  ;;  %v1325_v32 = vcombine.low %v913_v5, %v925_v19 }
 0x2b3   : > { %v943_v23 = vpop.permute.xlu0 %942 }
 0x2b4   : > { %v936_v25 = vsel %vm580_vm12, %v934_v21, %v935_v22  ;;  %v946_v30 = vrot.slane %v943_v23, 4 }
 0x2b5   : > { %v937_v27 = vsel %vm648_vm4, %v931_v14, %v936_v25  ;;  %v945_v28 = vpop.permute.xlu1 %944  ;;  %v1427_v29 = vld [vmem:[#allocation4 + $0x38] ss:$12 sps:$4 sm:$0xff]   ;;  %1080 = vmatpush1.bf16.msra.mxu0 %v1322_v24 }
 0x2b6   : > { %v947_v31 = vrot.slane %v945_v28, 4  ;;  %953 = vst.msk [vmem:[#allocation4 + $0x5c] sm:$0xf] %vm868_vm0, %v945_v28  ;;  %1081 = vmatprep.subr.bf16.mxu0 %v1326_v26  ;;  %1367 = vmatpush3.bf16.msra.mxu1 %v1427_v29 }
 0x2b7   : > { %v955_v4 = vpop.permute.xlu0 %954  ;;  %1368 = vmatprep.subr.bf16.mxu1 %v1462_v18 }
 0x2b8   : > { %v948_v33 = vsel %vm580_vm12, %v946_v30, %v947_v31  ;;  %v958_v36 = vrot.slane %v955_v4, 4 }
 0x2b9   : > { %v949_v34 = vsel %vm661_vm3, %v943_v23, %v948_v33  ;;  %v957_v35 = vpop.permute.xlu1 %956  ;;  %1082 = vmatpush1.bf16.msra.mxu0 %v1325_v32 }
 0x2ba   : > { %v959_v37 = vrot.slane %v957_v35, 4  ;;  %965 = vst.msk [vmem:[#allocation4 + $0x68] sm:$0xf] %vm868_vm0, %v957_v35  ;;  %v1328_v38 = vcombine.low %v937_v27, %v949_v34  ;;  %v1329_v39 = vcombine.high %v937_v27, %v949_v34 }
 0x2bc   : > { %v960_v40 = vsel %vm580_vm12, %v958_v36, %v959_v37  ;;  %1083 = vmatprep.subr.bf16.mxu0 %v1329_v39 }
 0x2bd   : > { %v961_v41 = vsel %vm674_vm5, %v955_v4, %v960_v40  ;;  %v1428_v42 = vld [vmem:[#allocation4 + $0x50] ss:$12 sps:$4 sm:$0xff]   ;;  %1084 = vmatpush1.bf16.msra.mxu0 %v1328_v38 }
 0x2be   : > { %v1332_v3 = vcombine.high %v961_v41, %v961_v41  ;;  %v1331_v43 = vcombine.low %v961_v41, %v961_v41  ;;  %1369 = vmatpush3.bf16.msra.mxu1 %v1428_v42 }
 0x2bf   : > { %1370 = vmatprep.subr.bf16.mxu1 %v1462_v18 }
 0x2c0   : > { %1334 = vmatprep.subr.msk.bf16.mxu0 %vm580_vm12, %v1332_v3  ;;  %v1069_v45 = vsel %vm580_vm12, %v1331_v43, 0 }
 0x2c1   : > { %v1429_v46 = vld [vmem:[#allocation4 + $0x68] ss:$0 sps:$4 sm:$0xff]   ;;  %1086 = vmatpush1.bf16.msra.mxu0 %v1069_v45 }
 0x2c2   : > { %v1075_v47 = vsel %vm580_vm12, %v1429_v46, 0 }
 0x2c3   : > { %1371 = vmatpush3.bf16.msra.mxu1 %v1075_v47 }
 0x2c4   : > { %1335 = vmatmul.mubr.msk.bf16.vlgmr.msra.gmra.mrb[4].mxu0 %vm1063_vm7, %v966_v44 }
 0x2c6   : > { %1373 = vmatmul.mubr.msk.bf16.vlgmr.msra.gmra.mrb[4].mxu1 %vm1063_vm7, %v966_v44 }
 0x2c8   : > { %v989_v48 = vpop.permute.xlu0 %988 }
 0x397   : > { %v1111_v49 = vpop.f32.mrb[4].mxu0 }
 0x398   : > { %v1112_v50 = vadd.f32 %v1111_v49, %v989_v48  ;;  %v1113_v51 = vpop.f32.mrb[5].mxu0 }
 0x399   : > { %v1114_v52 = vadd.f32 %v1113_v51, %v989_v48  ;;  %v1115_v53 = vpop.f32.mrb[6].mxu0  ;;  %v1152_v54 = vpop.f32.mrb[4].mxu1 }
 0x39a   : > { %v1158_v55 = vmax.f32 %v1112_v50, 0.0  ;;  %v1116_v56 = vpop.f32.mrb[7].mxu0  ;;  %v1153_v57 = vadd.f32 %v1152_v54, %v989_v48  ;;  %v1374_v59 = vpop.f32.mrb[5].mxu1 }
 0x39b   : > { %v1159_v58 = vmax.f32 %v1114_v52, 0.0  ;;  %v1155_v60 = vpop.f32.mrb[6].mxu1 }
 0x39c   : > { %1161 = vst [vmem:[%s286_s23] sm:$0xff] %v1158_v55  ;;  %1168 = vrot.lane.b32.xlu1 %v1158_v55, %s1457_s26  ;;  %v1160_v61 = vmax.f32 %v1153_v57, 0.0  ;;  %v1375_v62 = vpop.f32.mrb[7].mxu1 }
 0x39d   : > { %1162 = vst [vmem:[%s286_s23 + $0x8] sm:$0xff] %v1159_v58  ;;  %1170 = vrot.lane.b32.xlu0 %v1159_v58, %s1457_s26 }
 0x39e   : > { %1164 = vst.msk [vmem:[%s286_s23 + $0x10] sm:$0xff] %vm1163_vm8, %v1160_v61 }
 0x3a0   : > { %1172 = vrot.lane.b32.xlu1 %v1160_v61, %s1457_s26 }
 0x40e   : > { %v1169_v63 = vpop.permute.xlu1 %1168 }
 0x40f   : > { %v1171_v0 = vpop.permute.xlu0 %1170 }
 0x410   : > { %v1175_v1 = vsel %vm582_vm13, %v1169_v63, %v1171_v0 }
 0x411   : > { %v1180_v2 = vmax.f32 %v1158_v55, %v1175_v1 }
 0x412   : > { %v1173_v5 = vpop.permute.xlu1 %1172 }
 0x413   : > { %v1176_v7 = vsel %vm582_vm13, %v1171_v0, %v1173_v5  ;;  %1186 = vrot.lane.b32.xlu0 %v1180_v2, %s1459_s28  ;;  %v1182_v9 = vmax.f32 %v1160_v61, %v1173_v5 }
 0x414   : > { %v1181_v8 = vmax.f32 %v1159_v58, %v1176_v7 }
 0x416   : > { %1188 = vrot.lane.b32.xlu1 %v1181_v8, %s1459_s28 }
 0x417   : > { %1190 = vrot.lane.b32.xlu0 %v1182_v9, %s1459_s28 }
 0x485   : > { %v1187_v10 = vpop.permute.xlu0 %1186 }
 0x488   : > { %v1189_v11 = vpop.permute.xlu1 %1188 }
 0x489   : > { %v1193_v12 = vsel %vm609_vm14, %v1187_v10, %v1189_v11  ;;  %v1191_v13 = vpop.permute.xlu0 %1190 }
 0x48a   : > { %v1198_v14 = vmax.f32 %v1180_v2, %v1193_v12  ;;  %v1194_v15 = vsel %vm609_vm14, %v1189_v11, %v1191_v13  ;;  %v1200_v16 = vmax.f32 %v1182_v9, %v1191_v13 }
 0x48b   : > { %v1199_v17 = vmax.f32 %v1181_v8, %v1194_v15 }
 0x48c   : > { %1201 = vst [vmem:[%s291_s29] sm:$0xff] %v1198_v14  ;;  %1204 = vst.msk [vmem:[%s291_s29 + $0x10] sm:$0xff] %vm1203_vm9, %v1200_v16 }
 0x48d   : > { %1202 = vst [vmem:[%s291_s29 + $0x8] sm:$0xff] %v1199_v17  ;;  %1206 = vst.msk [vmem:[%s291_s29 + $0x10] sm:$0xff] %vm1205_vm10, %v1462_v18 }
 0x48e PF: > { %s18_s24 = sadd.s32 1, %s1436_s24  }
 0x48f   : > { %p15_p4 = scmp.ge.s32.totalorder %s18_s24, 4  }
 0x491   :  { %17 = sbr.rel (!%p15_p4) target bundleno = 1 (0x1), region = 86 }

</bundles_post_ra>
